<compile_context>
chip_gen: v5e
topology: v5e:2x2
jax: 0.10.0
libtpu: 0.0.40
codegen_flags: <defaults>
</compile_context>

<pallas_src>
import jax
import jax.numpy as jnp
from jax.experimental import pallas as pl
from jax.experimental.pallas import tpu as pltpu

_TARGET_BLOCK_BYTES = 1 << 20   # ~1 MiB of f32 per array per grid step
_MOD_CLAMP = 1e-5               # clamp(|z|, min=1e-5), as in torchcomplex


def _cmodrelu_kernel(thr_ref, re_ref, im_ref, ore_ref, oim_ref):
    re = re_ref[...]                       # (block_rows, lanes)
    im = im_ref[...]
    thr = thr_ref[...]                     # (block_rows, 1), broadcast over lanes
    sq = re * re + im * im
    # 1 / clamp(|z|, min=1e-5) == rsqrt(max(|z|^2, 1e-10)); rsqrt uses the EUP
    # slot instead of a VALU divide chain.
    inv_mod = jax.lax.rsqrt(jnp.maximum(sq, _MOD_CLAMP * _MOD_CLAMP))
    scale = jnp.maximum(1.0 - thr * inv_mod, 0.0)   # relu(1 - t/|z|)
    ore_ref[...] = re * scale
    oim_ref[...] = im * scale


def _choose_block_rows(rows, lanes, itemsize=4):
    """Largest multiple-of-8 row count whose f32 block is ~<= 1 MiB."""
    bytes_per_row = lanes * itemsize
    br = max(8, (_TARGET_BLOCK_BYTES // max(bytes_per_row, 1)) // 8 * 8)
    if br >= rows:
        return rows            # full-extent block along rows (always legal)
    return br                  # multiple of 8; ragged tail handled by Pallas


def _threshold_per_row(threshold, n, c, dtype):
    """Broadcast the learnable threshold to one value per (n, c) row."""
    t = jnp.asarray(threshold, dtype).reshape(-1)
    if t.size == 1:
        t_c = jnp.broadcast_to(t, (c,))
    elif t.size == c:
        t_c = t                # per-channel thresholds, e.g. shape (C,1,1)
    else:
        # TODO(synk): thresholds that vary over spatial/lane dims would need a
        # 2-D (rows, lanes) threshold layout; not needed for this module.
        raise ValueError(f"threshold of size {t.size} does not broadcast to "
                         f"a scalar or per-channel ({c}) value")
    return jnp.broadcast_to(t_c[None, :], (n, c)).reshape(n * c, 1)


def adaptive_cmodrelu(real, imag, threshold):
    """AdaptiveCmodReLU forward on (real, imag) float32 NCHW arrays."""
    assert real.shape == imag.shape and real.ndim == 4
    n, c, h, w = real.shape
    rows, lanes = n * c, h * w

    re2d = real.reshape(rows, lanes)       # free reshape of contiguous array
    im2d = imag.reshape(rows, lanes)
    thr_rows = _threshold_per_row(threshold, n, c, real.dtype)

    block_rows = _choose_block_rows(rows, lanes)
    grid = (pl.cdiv(rows, block_rows),)
    data_spec = pl.BlockSpec((block_rows, lanes), lambda i: (i, 0))
    thr_spec = pl.BlockSpec((block_rows, 1), lambda i: (i, 0))

    ore2d, oim2d = pl.pallas_call(
        _cmodrelu_kernel,
        out_shape=(jax.ShapeDtypeStruct((rows, lanes), real.dtype),
                   jax.ShapeDtypeStruct((rows, lanes), imag.dtype)),
        grid_spec=pltpu.PrefetchScalarGridSpec(
            num_scalar_prefetch=0,
            grid=grid,
            in_specs=[thr_spec, data_spec, data_spec],
            out_specs=(data_spec, data_spec),
        ),
        compiler_params=pltpu.CompilerParams(
            dimension_semantics=("parallel",)),
    )(thr_rows, re2d, im2d)

    return ore2d.reshape(real.shape), oim2d.reshape(imag.shape)


def _cmodrelu_ref(real, imag, threshold):
    """Pure-JAX reference: z * relu(1 - t / clamp(|z|, 1e-5))."""
    n, c, h, w = real.shape
    t = jnp.asarray(threshold, real.dtype).reshape(-1)
    if t.size == 1:
        t_full = jnp.broadcast_to(t.reshape(1, 1, 1, 1), real.shape)
    else:
        t_full = jnp.broadcast_to(t.reshape(1, c, 1, 1), real.shape)
    mod = jnp.maximum(jnp.sqrt(real * real + imag * imag), _MOD_CLAMP)
    scale = jnp.maximum(1.0 - t_full / mod, 0.0)
    return real * scale, imag * scale


if __name__ == "__main__":
    key = jax.random.PRNGKey(0)
    k_re, k_im, k_t1, k_tc = jax.random.split(key, 4)

    shape = (2, 4, 16, 16)  # NCHW complex activation map (small demo)
    x_re = jax.random.normal(k_re, shape, dtype=jnp.float32)
    x_im = jax.random.normal(k_im, shape, dtype=jnp.float32)

    # AdaptiveCmodReLU() default: one shared threshold, Parameter(randn(1)*0.02)
    thr_scalar = jax.random.normal(k_t1, (1,), dtype=jnp.float32) * 0.02
    # AdaptiveCmodReLU(C, 1, 1): one threshold per channel
    thr_chan = jax.random.normal(k_tc, (shape[1], 1, 1), dtype=jnp.float32) * 0.02

    ok = True
    for thr in (thr_scalar, thr_chan):
        out_re, out_im = adaptive_cmodrelu(x_re, x_im, thr)
        jax.block_until_ready((out_re, out_im))
        ref_re, ref_im = _cmodrelu_ref(x_re, x_im, thr)
        ok &= bool(jnp.allclose(out_re, ref_re, atol=1e-5, rtol=1e-5))
        ok &= bool(jnp.allclose(out_im, ref_im, atol=1e-5, rtol=1e-5))

    print("KERNEL_OK" if ok else "KERNEL_MISMATCH")
</pallas_src>

<mosaic_0001>
module attributes {stable_mosaic.version = 11 : i64} {
  func.func @_cmodrelu_kernel(%arg0: i32, %arg1: memref<8x1xf32, #tpu.memory_space<vmem>>, %arg2: memref<8x256xf32, #tpu.memory_space<vmem>>, %arg3: memref<8x256xf32, #tpu.memory_space<vmem>>, %arg4: memref<8x256xf32, #tpu.memory_space<vmem>>, %arg5: memref<8x256xf32, #tpu.memory_space<vmem>>) attributes {dimension_semantics = [#tpu.dimension_semantics<parallel>], iteration_bounds = array<i64: 1>, scalar_prefetch = 0 : i64, scratch_operands = 0 : i64, tpu.core_type = #tpu.core_type<tc>, window_params = [{transform_indices = @transform_0, window_bounds = array<i64: 8, 1>}, {transform_indices = @transform_1, window_bounds = array<i64: 8, 256>}, {transform_indices = @transform_2, window_bounds = array<i64: 8, 256>}, {transform_indices = @transform_3, window_bounds = array<i64: 8, 256>}, {transform_indices = @transform_4, window_bounds = array<i64: 8, 256>}]} {
    %c0 = arith.constant 0 : index
    %c0_0 = arith.constant 0 : index
    %0 = vector.load %arg2[%c0, %c0_0] : memref<8x256xf32, #tpu.memory_space<vmem>>, vector<8x256xf32>
    %c0_1 = arith.constant 0 : index
    %c0_2 = arith.constant 0 : index
    %1 = vector.load %arg3[%c0_1, %c0_2] : memref<8x256xf32, #tpu.memory_space<vmem>>, vector<8x256xf32>
    %c0_3 = arith.constant 0 : index
    %c0_4 = arith.constant 0 : index
    %2 = vector.load %arg1[%c0_3, %c0_4] : memref<8x1xf32, #tpu.memory_space<vmem>>, vector<8x1xf32>
    %3 = arith.mulf %0, %0 : vector<8x256xf32>
    %4 = arith.mulf %1, %1 : vector<8x256xf32>
    %5 = arith.addf %3, %4 : vector<8x256xf32>
    %cst = arith.constant 1.000000e-10 : f32
    %6 = vector.broadcast %cst : f32 to vector<8x256xf32>
    %7 = arith.maximumf %5, %6 : vector<8x256xf32>
    %8 = math.rsqrt %7 : vector<8x256xf32>
    %9 = vector.broadcast %2 : vector<8x1xf32> to vector<8x256xf32>
    %10 = arith.mulf %9, %8 : vector<8x256xf32>
    %cst_5 = arith.constant 1.000000e+00 : f32
    %11 = vector.broadcast %cst_5 : f32 to vector<8x256xf32>
    %12 = arith.subf %11, %10 : vector<8x256xf32>
    %cst_6 = arith.constant 0.000000e+00 : f32
    %13 = vector.broadcast %cst_6 : f32 to vector<8x256xf32>
    %14 = arith.maximumf %12, %13 : vector<8x256xf32>
    %15 = arith.mulf %0, %14 : vector<8x256xf32>
    %c0_7 = arith.constant 0 : index
    %c0_8 = arith.constant 0 : index
    %16 = vector.load %arg4[%c0_7, %c0_8] : memref<8x256xf32, #tpu.memory_space<vmem>>, vector<8x256xf32>
    tpu.vector_store %arg4[%c0_7, %c0_8], %15 {strides = array<i32>} : memref<8x256xf32, #tpu.memory_space<vmem>>, vector<8x256xf32>,
    %17 = arith.mulf %1, %14 : vector<8x256xf32>
    %c0_9 = arith.constant 0 : index
    %c0_10 = arith.constant 0 : index
    %18 = vector.load %arg5[%c0_9, %c0_10] : memref<8x256xf32, #tpu.memory_space<vmem>>, vector<8x256xf32>
    tpu.vector_store %arg5[%c0_9, %c0_10], %17 {strides = array<i32>} : memref<8x256xf32, #tpu.memory_space<vmem>>, vector<8x256xf32>,
    return
  }
  func.func @transform_0(%arg0: i32) -> (i32, i32) {
    %c0_i32 = arith.constant 0 : i32
    %c0_i32_0 = arith.constant 0 : i32
    return %arg0, %c0_i32 : i32, i32
  }
  func.func @transform_1(%arg0: i32) -> (i32, i32) {
    %c0_i32 = arith.constant 0 : i32
    %c0_i32_0 = arith.constant 0 : i32
    return %arg0, %c0_i32 : i32, i32
  }
  func.func @transform_2(%arg0: i32) -> (i32, i32) {
    %c0_i32 = arith.constant 0 : i32
    %c0_i32_0 = arith.constant 0 : i32
    return %arg0, %c0_i32 : i32, i32
  }
  func.func @transform_3(%arg0: i32) -> (i32, i32) {
    %c0_i32 = arith.constant 0 : i32
    %c0_i32_0 = arith.constant 0 : i32
    return %arg0, %c0_i32 : i32, i32
  }
  func.func @transform_4(%arg0: i32) -> (i32, i32) {
    %c0_i32 = arith.constant 0 : i32
    %c0_i32_0 = arith.constant 0 : i32
    return %arg0, %c0_i32 : i32, i32
  }
}

</mosaic_0001>

<bundles_post_ra>
// kernel: tpu_custom_call.1
= control target key start
LH: loop header
LB: loop body
LE: loop exit
PB: predicated region body
PF: predicated region fallthrough
CT: control target
= control target key end

     0   :  { %10 = vsyncpa [#allocation3], 0  ;;  %s291_s0 = inlined_call_operand.vmem [shape: f32[8,1], index: 0, kind: input, shape index: {}]   ;;  %s292_s1 = inlined_call_operand.hbm [shape: f32[8,256], index: 1, kind: input, shape index: {}]   ;;  %s293_s2 = inlined_call_operand.hbm [shape: f32[8,256], index: 2, kind: input, shape index: {}]   ;;  %s294_s3 = inlined_call_operand.hbm [shape: f32[8,256], index: 3, kind: output, shape index: {0}]   ;;  %s295_s4 = inlined_call_operand.hbm [shape: f32[8,256], index: 4, kind: output, shape index: {1}]  }
   0x1   :  { %11 = vsyncpa [#allocation6], 0 }
   0x2   :  { %12 = vsyncpa [#allocation4], 0 }
   0x3   :  { %13 = vsyncpa [#allocation9], 0  ;;  %s21_s17 = sshll.u32 %s292_s1, 4  ;;  %s246_s18 = smov [#allocation2]   ;;  %s22_s17 = int_to_ptr.hbm [resolvable:$true] %s21_s17 }
   0x4   :  { %s23_s19 = sshll.u32 %s246_s18, 4  ;;  %s32_s22 = sshll.u32 %s293_s2, 4  ;;  %s24_s19 = int_to_ptr.vmem [resolvable:$true] %s23_s19  ;;  %s33_s22 = int_to_ptr.hbm [resolvable:$true] %s32_s22 }
   0x5   :  { %26 = dma.hbm_to_vmem [thread:$0]  %s22_s17, 256, %s24_s19, [#allocation3]  }
   0x6   :  { %s247_s23 = smov [#allocation5]  }
   0x7   :  { %s34_s24 = sshll.u32 %s247_s23, 4  ;;  %s35_s24 = int_to_ptr.vmem [resolvable:$true] %s34_s24 }
   0x8   :  { %37 = dma.hbm_to_vmem [thread:$0]  %s33_s22, 256, %s35_s24, [#allocation6]  }
   0x9   :  { %238 = dma.done.wait [#allocation3], 256  }
   0xa   :  { %239 = vsyncadd [#allocation3], 4294967040 }
   0xb   :  { %240 = dma.done.wait [#allocation6], 256  }
   0xc   :  { %241 = vsyncadd [#allocation6], 4294967040  ;;  %v248_v0 = vmov 0   ;;  %v50_v1 = vld [vmem:[%s291_s0] sm:$0xff]  ;;  %v48_v3 = vld [vmem:[#allocation5] sm:$0xff]  ;;  %s249_s0 = smov [#allocation7]  }
   0xd   :  { %137 = vset.pattern.permute.xlu0 %v248_v0  ;;  %v46_v2 = vld [vmem:[#allocation2] sm:$0xff]  ;;  %v47_v4 = vld [vmem:[#allocation2 + $0x8] sm:$0xff]  ;;  %v49_v5 = vld [vmem:[#allocation5 + $0x8] sm:$0xff]  ;;  %v53_v7 = vmul.f32 %v48_v3, %v48_v3  ;;  %s103_s2 = sshll.u32 %s249_s0, 4  ;;  %s105_s28 = sshll.u32 %s294_s3, 4  ;;  %s104_s2 = int_to_ptr.vmem [resolvable:$true] %s103_s2  ;;  %s106_s28 = int_to_ptr.hbm [resolvable:$true] %s105_s28 }
   0xe   :  { %81 = vperm.xlu0 %137, %v50_v1   ;;  %v51_v6 = vmul.f32 %v46_v2, %v46_v2  ;;  %v52_v8 = vmul.f32 %v47_v4, %v47_v4  ;;  %v54_v9 = vmul.f32 %v49_v5, %v49_v5  ;;  %s250_s29 = smov [#allocation8]   ;;  %s116_s7 = sshll.u32 %s295_s4, 4  ;;  %s117_s7 = int_to_ptr.hbm [resolvable:$true] %s116_s7 }
   0xf   :  { %s114_s30 = sshll.u32 %s250_s29, 4  ;;  %s115_s30 = int_to_ptr.vmem [resolvable:$true] %s114_s30 }
  0x10   :  { %v55_v10 = vadd.f32 %v53_v7, %v51_v6  ;;  %v56_v11 = vadd.f32 %v54_v9, %v52_v8 }
  0x12   :  { %v57_v12 = vmax.f32 %v55_v10, 1e-10  ;;  %v58_v13 = vmax.f32 %v56_v11, 1e-10 }
  0x14   :  { %138 = vrsqrt.f32 %v57_v12  ;;  %vm65_vm0 = vweird.f32 %v57_v12  ;;  %vm75_vm2 = vweird.f32 %v58_v13 }
  0x15   :  { %140 = vrsqrt.f32 %v58_v13 }
  0x1a   :  { %v139_v14 = vpop.eup %138 }
  0x1b   :  { %v141_v15 = vpop.eup %140  ;;  %v60_v16 = vmul.f32 %v139_v14, %v57_v12  ;;  %vm66_vm1 = vweird.f32 %v139_v14 }
  0x1c   :  { %v70_v17 = vmul.f32 %v141_v15, %v58_v13  ;;  %vm76_vm3 = vweird.f32 %v141_v15  ;;  %vm67_vm4 = vmor %vm65_vm0, %vm66_vm1 }
  0x1d   :  { %v61_v18 = vmul.f32 %v139_v14, %v60_v16  ;;  %vm77_vm5 = vmor %vm75_vm2, %vm76_vm3 }
  0x1e   :  { %v71_v19 = vmul.f32 %v141_v15, %v70_v17 }
  0x1f   :  { %v62_v20 = vmul.f32 0.5, %v61_v18 }
  0x20   :  { %v72_v21 = vmul.f32 0.5, %v71_v19 }
  0x21   :  { %v63_v22 = vsub.f32 1.5, %v62_v20 }
  0x22   :  { %v73_v23 = vsub.f32 1.5, %v72_v21 }
  0x23   :  { %v64_v24 = vmul.f32 %v139_v14, %v63_v22 }
  0x24   :  { %v74_v25 = vmul.f32 %v141_v15, %v73_v23 }
  0x25   :  { %v68_v26 = vsel %vm67_vm4, %v139_v14, %v64_v24 }
  0x26   :  { %v78_v27 = vsel %vm77_vm5, %v141_v15, %v74_v25 }
  0x80   :  { %v82_v28 = vpop.permute.xlu0 %81 }
  0x81   :  { %v84_v29 = vmul.f32 %v82_v28, %v68_v26  ;;  %v85_v30 = vmul.f32 %v82_v28, %v78_v27 }
  0x83   :  { %v86_v31 = vsub.f32 1.0, %v84_v29  ;;  %v87_v32 = vsub.f32 1.0, %v85_v30 }
  0x85   :  { %v88_v33 = vmax.f32 %v86_v31, 0.0  ;;  %v89_v34 = vmax.f32 %v87_v32, 0.0 }
  0x87   :  { %v90_v35 = vmul.f32 %v88_v33, %v46_v2  ;;  %v91_v36 = vmul.f32 %v89_v34, %v47_v4  ;;  %v94_v37 = vmul.f32 %v88_v33, %v48_v3  ;;  %v95_v38 = vmul.f32 %v89_v34, %v49_v5 }
  0x89   :  { %92 = vst [vmem:[#allocation7] sm:$0xff] %v90_v35 }
  0x8a   :  { %93 = vst [vmem:[#allocation7 + $0x8] sm:$0xff] %v91_v36 }
  0x8b   :  { %96 = vst [vmem:[#allocation8] sm:$0xff] %v94_v37  ;;  %108 = dma.vmem_to_hbm [thread:$0]  %s104_s2, 256, %s106_s28, [#allocation4]  }
  0x8c   :  { %97 = vst [vmem:[#allocation8 + $0x8] sm:$0xff] %v95_v38 }
  0x8d   :  { %119 = dma.vmem_to_hbm [thread:$0]  %s115_s30, 256, %s117_s7, [#allocation9]  }
  0x8e   :  { %242 = dma.done.wait [#allocation4], 256  }
  0x8f   :  { %243 = vsyncadd [#allocation4], 4294967040 }
  0x90   :  { %244 = dma.done.wait [#allocation9], 256  }
  0x91   :  { %245 = vsyncadd [#allocation9], 4294967040 }
  0x92   :  { %128 = vsyncpa [#allocation3], 1 }
  0x93   :  { %129 = vsyncpa [#allocation6], 1 }
  0x94   :  { %130 = vsyncpa [#allocation4], 1 }
  0x95   :  { %131 = vsyncpa [#allocation9], 1 }

</bundles_post_ra>
